<compile_context>
chip_gen: v6e
topology: v6e:2x2x1
jax: 0.10.0
libtpu: 0.0.40
codegen_flags: <defaults>
</compile_context>

<pallas_src>
import functools

import jax
import jax.numpy as jnp
from jax.experimental import pallas as pl
from jax.experimental.pallas import tpu as pltpu


# --------------------------------------------------------------------------
# Single-pass kernel: pool -> fc1 -> ReLU -> fc2 -> sigmoid -> scale
# --------------------------------------------------------------------------
def _light_channel_attn_kernel(x_ref, w1t_ref, w2t_ref, o_ref, *, hw):
    # x_ref:   (Bt, C, HW) VMEM tile in the input's native dtype
    # w1t_ref: (C, C_red)  fc1 weight, pre-transposed (1x1 conv, no bias)
    # w2t_ref: (C_red, C)  fc2 weight, pre-transposed (1x1 conv, no bias)
    x = x_ref[...]

    # Pooling: 0.5*mean + 0.5*max over spatial.  Sum accumulates in f32, max
    # stays in the native dtype; only the small (Bt, C) results are f32.
    x_sum = jnp.sum(x, axis=-1, dtype=jnp.float32)        # (Bt, C)
    x_max = jnp.max(x, axis=-1).astype(jnp.float32)       # (Bt, C)
    pool = 0.5 * (x_sum * (1.0 / hw) + x_max)             # (Bt, C)

    # Tiny fc1 -> ReLU -> fc2 on the pooled vector only.
    w1t = w1t_ref[...].astype(jnp.float32)                # (C, C_red)
    w2t = w2t_ref[...].astype(jnp.float32)                # (C_red, C)
    h = jnp.maximum(
        jnp.dot(pool, w1t, preferred_element_type=jnp.float32), 0.0)
    attn = jnp.dot(h, w2t, preferred_element_type=jnp.float32)   # (Bt, C)
    gate = jax.nn.sigmoid(attn).astype(x.dtype)[:, :, None]      # (Bt, C, 1)

    # Elementwise scale in the input's dtype; single full-tile op.
    o_ref[...] = (x * gate).astype(o_ref.dtype)


# --------------------------------------------------------------------------
# Fallback two-pass path (huge C*HW rows that cannot fit in VMEM on v7x)
# --------------------------------------------------------------------------
def _pool_rows_kernel(x_ref, pool_ref, *, hw):
    x = x_ref[...]                                         # (Rt, HW)
    s = jnp.sum(x, axis=-1, dtype=jnp.float32)             # (Rt,)
    m = jnp.max(x, axis=-1).astype(jnp.float32)            # (Rt,)
    pool_ref[...] = (0.5 * (s * (1.0 / hw) + m))[:, None]  # (Rt, 1) f32


def _scale_rows_kernel(x_ref, gate_ref, o_ref):
    x = x_ref[...]                                         # (Rt, HW)
    o_ref[...] = (x * gate_ref[...].astype(x.dtype)).astype(o_ref.dtype)


def _two_pass_path(x_flat, w1, w2, B, C, HW, itemsize, vmem_cap,
                   target_tile_bytes):
    R = B * C
    x2d = x_flat.reshape(R, HW)                            # layout-preserving
    row_bytes = HW * itemsize

    rt = min(R, max(1, target_tile_bytes // max(1, row_bytes)))
    if rt < R:
        rt = min(R, max(8, (rt // 8) * 8))                 # sublane multiple
    grid_r = pl.cdiv(R, rt)
    # TODO(synk): if a single spatial row (8*HW*itemsize) still exceeds the
    # VMEM budget, a spatial-chunked accumulation pass would be needed.

    pool_vmem = int(min(vmem_cap, max(16 << 20, 3 * rt * row_bytes + (2 << 20))))
    pool = pl.pallas_call(
        functools.partial(_pool_rows_kernel, hw=HW),
        out_shape=jax.ShapeDtypeStruct((R, 1), jnp.float32),
        grid_spec=pltpu.PrefetchScalarGridSpec(
            num_scalar_prefetch=0,
            grid=(grid_r,),
            in_specs=[pl.BlockSpec((rt, HW), lambda r: (r, 0))],
            out_specs=pl.BlockSpec((rt, 1), lambda r: (r, 0)),
        ),
        compiler_params=pltpu.CompilerParams(
            dimension_semantics=("parallel",),
            vmem_limit_bytes=pool_vmem),
    )(x2d)

    # Tiny fc + sigmoid on (B, C) — negligible, plain JAX.
    pool_bc = pool.reshape(B, C)
    h = jnp.maximum(pool_bc @ w1.T.astype(jnp.float32), 0.0)
    attn = h @ w2.T.astype(jnp.float32)
    gate = jax.nn.sigmoid(attn).reshape(R, 1)              # f32

    scale_vmem = int(min(vmem_cap, max(16 << 20, 5 * rt * row_bytes + (2 << 20))))
    out2d = pl.pallas_call(
        _scale_rows_kernel,
        out_shape=jax.ShapeDtypeStruct((R, HW), x2d.dtype),
        grid_spec=pltpu.PrefetchScalarGridSpec(
            num_scalar_prefetch=0,
            grid=(grid_r,),
            in_specs=[pl.BlockSpec((rt, HW), lambda r: (r, 0)),
                      pl.BlockSpec((rt, 1), lambda r: (r, 0))],
            out_specs=pl.BlockSpec((rt, HW), lambda r: (r, 0)),
        ),
        compiler_params=pltpu.CompilerParams(
            dimension_semantics=("parallel",),
            vmem_limit_bytes=scale_vmem),
    )(x2d, gate)
    return out2d.reshape(B, C, HW)


# --------------------------------------------------------------------------
# Wrapper
# --------------------------------------------------------------------------
def light_channel_attn(x, w1, w2):
    """x: (B, C, H, W) NCHW.  w1: (C_red, C).  w2: (C, C_red)."""
    B, C, H, W = x.shape
    HW = H * W
    x_flat = x.reshape(B, C, HW)                           # free reshape
    itemsize = jnp.dtype(x.dtype).itemsize

    # Generation-aware VMEM budget.
    try:
        info = pltpu.get_tpu_info()
        vmem_capacity = int(getattr(info, "vmem_capacity_bytes", 64 << 20))
    except Exception:
        vmem_capacity = 64 << 20
    if vmem_capacity >= (100 << 20):       # v5e / v6e: 128 MiB physical
        vmem_cap = 100 << 20
        target_tile_bytes = 16 << 20
    else:                                  # v7x: 64 MiB physical
        vmem_cap = 48 << 20
        target_tile_bytes = 6 << 20

    row_bytes = C * HW * itemsize
    w_bytes = 4 * (w1.size + w2.size) * 4

    # If even a single batch row can't be double-buffered (in + out), use the
    # two-pass fallback over the (B*C, HW) view.
    if 5 * row_bytes + w_bytes + (2 << 20) > vmem_cap:
        out_flat = _two_pass_path(x_flat, w1, w2, B, C, HW, itemsize,
                                  vmem_cap, target_tile_bytes)
        return out_flat.reshape(B, C, H, W)

    # Batch rows per grid step: aim at target_tile_bytes, then make sure the
    # (parallel) batch axis has >=2 steps (v7x megacore + pipelining), and
    # prefer >=4 steps while tiles stay >= ~2 MiB.
    bt = max(1, min(B, target_tile_bytes // max(1, row_bytes)))
    steps = pl.cdiv(B, bt)
    if steps < 4 and B >= 4 and pl.cdiv(B, 4) * row_bytes >= (2 << 20):
        bt = pl.cdiv(B, 4)
    elif steps < 2 and B >= 2:
        bt = pl.cdiv(B, 2)
    steps = pl.cdiv(B, bt)

    tile_bytes = bt * row_bytes
    # in + out tiles double-buffered, + one tile of compute headroom + weights.
    vmem_needed = 5 * tile_bytes + w_bytes + (2 << 20)
    vmem_limit = int(min(vmem_cap, max(16 << 20, vmem_needed)))

    C_red = w1.shape[0]
    out = pl.pallas_call(
        functools.partial(_light_channel_attn_kernel, hw=HW),
        out_shape=jax.ShapeDtypeStruct((B, C, HW), x.dtype),
        grid_spec=pltpu.PrefetchScalarGridSpec(
            num_scalar_prefetch=0,
            grid=(steps,),
            in_specs=[
                pl.BlockSpec((bt, C, HW), lambda b: (b, 0, 0)),
                pl.BlockSpec((C, C_red), lambda b: (0, 0)),   # w1.T
                pl.BlockSpec((C_red, C), lambda b: (0, 0)),   # w2.T
            ],
            out_specs=pl.BlockSpec((bt, C, HW), lambda b: (b, 0, 0)),
        ),
        compiler_params=pltpu.CompilerParams(
            dimension_semantics=("parallel",),
            vmem_limit_bytes=vmem_limit),
    )(x_flat, w1.T, w2.T)

    return out.reshape(B, C, H, W)


def light_channel_attn_ref(x, w1, w2):
    """Pure-JAX reference matching the PyTorch forward."""
    x_avg = jnp.mean(x, axis=(2, 3), keepdims=True)
    x_max = jnp.max(x, axis=(2, 3), keepdims=True)
    pool = (0.5 * x_avg + 0.5 * x_max)[..., 0, 0]           # (B, C)
    h = jnp.maximum(pool @ w1.T, 0.0)                        # (B, C_red)
    attn = h @ w2.T                                          # (B, C)
    gate = jax.nn.sigmoid(attn)[:, :, None, None]
    return x * gate


if __name__ == "__main__":
    reduction = 16
    key = jax.random.PRNGKey(0)

    ok = True
    # Two small shapes: one 128-aligned spatial size, one ragged (14x14=196)
    # to exercise the un-padded tail-store path.
    for (B, C, H, W) in [(2, 32, 16, 16), (2, 32, 14, 14)]:
        C_red = C // reduction  # 2
        kx, k1, k2, key = jax.random.split(key, 4)
        x = jax.random.normal(kx, (B, C, H, W), dtype=jnp.float32)
        w1 = jax.random.normal(k1, (C_red, C), dtype=jnp.float32) * 0.1
        w2 = jax.random.normal(k2, (C, C_red), dtype=jnp.float32) * 0.1

        out = jax.block_until_ready(light_channel_attn(x, w1, w2))
        ref = jax.block_until_ready(light_channel_attn_ref(x, w1, w2))

        ok = ok and out.shape == (B, C, H, W)
        ok = ok and bool(jnp.allclose(out, ref, atol=1e-5, rtol=1e-5))

    assert ok, "mismatch vs reference"
    print("KERNEL_OK")
</pallas_src>

<mosaic_0001>
module attributes {stable_mosaic.version = 11 : i64} {
  func.func @_light_channel_attn_kernel(%arg0: i32, %arg1: memref<1x32x256xf32, #tpu.memory_space<vmem>>, %arg2: memref<32x2xf32, #tpu.memory_space<vmem>>, %arg3: memref<2x32xf32, #tpu.memory_space<vmem>>, %arg4: memref<1x32x256xf32, #tpu.memory_space<vmem>>) attributes {dimension_semantics = [#tpu.dimension_semantics<parallel>], iteration_bounds = array<i64: 2>, scalar_prefetch = 0 : i64, scratch_operands = 0 : i64, tpu.core_type = #tpu.core_type<tc>, window_params = [{transform_indices = @transform_0, window_bounds = array<i64: 1, 32, 256>}, {pipeline_mode = #tpu.pipeline_mode<synchronous>, transform_indices = @transform_1, window_bounds = array<i64: 32, 2>}, {pipeline_mode = #tpu.pipeline_mode<synchronous>, transform_indices = @transform_2, window_bounds = array<i64: 2, 32>}, {transform_indices = @transform_3, window_bounds = array<i64: 1, 32, 256>}]} {
    %c0 = arith.constant 0 : index
    %c0_0 = arith.constant 0 : index
    %c0_1 = arith.constant 0 : index
    %0 = vector.load %arg1[%c0, %c0_0, %c0_1] : memref<1x32x256xf32, #tpu.memory_space<vmem>>, vector<1x32x256xf32>
    %cst = arith.constant dense<0.000000e+00> : vector<1x32xf32>
    %1 = vector.multi_reduction <add>, %0, %cst [2] : vector<1x32x256xf32> to vector<1x32xf32>
    %cst_2 = arith.constant dense<0xFF800000> : vector<1x32xf32>
    %2 = vector.multi_reduction <maximumf>, %0, %cst_2 [2] : vector<1x32x256xf32> to vector<1x32xf32>
    %cst_3 = arith.constant 3.906250e-03 : f32
    %3 = vector.broadcast %cst_3 : f32 to vector<1x32xf32>
    %4 = arith.mulf %1, %3 : vector<1x32xf32>
    %5 = arith.addf %4, %2 : vector<1x32xf32>
    %cst_4 = arith.constant 5.000000e-01 : f32
    %6 = vector.broadcast %cst_4 : f32 to vector<1x32xf32>
    %7 = arith.mulf %6, %5 : vector<1x32xf32>
    %c0_5 = arith.constant 0 : index
    %c0_6 = arith.constant 0 : index
    %8 = vector.load %arg2[%c0_5, %c0_6] : memref<32x2xf32, #tpu.memory_space<vmem>>, vector<32x2xf32>
    %c0_7 = arith.constant 0 : index
    %c0_8 = arith.constant 0 : index
    %9 = vector.load %arg3[%c0_7, %c0_8] : memref<2x32xf32, #tpu.memory_space<vmem>>, vector<2x32xf32>
    %cst_9 = arith.constant dense<0.000000e+00> : vector<1x2xf32>
    %10 = tpu.matmul %7, %8, %cst_9 {dimension_numbers = #tpu.dot_dimension_numbers<[1], [0], [0], [1], [0, 0, 1, 1], [], []>} : vector<1x32xf32>, vector<32x2xf32>, vector<1x2xf32> -> vector<1x2xf32>
    %cst_10 = arith.constant 0.000000e+00 : f32
    %11 = vector.broadcast %cst_10 : f32 to vector<1x2xf32>
    %12 = arith.maximumf %10, %11 : vector<1x2xf32>
    %cst_11 = arith.constant dense<0.000000e+00> : vector<1x32xf32>
    %13 = tpu.matmul %12, %9, %cst_11 {dimension_numbers = #tpu.dot_dimension_numbers<[1], [0], [0], [1], [0, 0, 1, 1], [], []>} : vector<1x2xf32>, vector<2x32xf32>, vector<1x32xf32> -> vector<1x32xf32>
    %14 = arith.negf %13 : vector<1x32xf32>
    %15 = math.exp %14 : vector<1x32xf32>
    %cst_12 = arith.constant 1.000000e+00 : f32
    %16 = vector.broadcast %cst_12 : f32 to vector<1x32xf32>
    %17 = arith.addf %16, %15 : vector<1x32xf32>
    %18 = arith.divf %16, %17 : vector<1x32xf32>
    %19 = vector.shape_cast %18 : vector<1x32xf32> to vector<1x32x1xf32>
    %20 = vector.broadcast %19 : vector<1x32x1xf32> to vector<1x32x256xf32>
    %21 = arith.mulf %0, %20 : vector<1x32x256xf32>
    %c0_13 = arith.constant 0 : index
    %c0_14 = arith.constant 0 : index
    %c0_15 = arith.constant 0 : index
    %22 = vector.load %arg4[%c0_13, %c0_14, %c0_15] : memref<1x32x256xf32, #tpu.memory_space<vmem>>, vector<1x32x256xf32>
    tpu.vector_store %arg4[%c0_13, %c0_14, %c0_15], %21 {strides = array<i32>} : memref<1x32x256xf32, #tpu.memory_space<vmem>>, vector<1x32x256xf32>,
    return
  }
  func.func @transform_0(%arg0: i32) -> (i32, i32, i32) {
    %c0_i32 = arith.constant 0 : i32
    %c0_i32_0 = arith.constant 0 : i32
    %c0_i32_1 = arith.constant 0 : i32
    return %arg0, %c0_i32, %c0_i32_0 : i32, i32, i32
  }
  func.func @transform_1(%arg0: i32) -> (i32, i32) {
    %c0_i32 = arith.constant 0 : i32
    %c0_i32_0 = arith.constant 0 : i32
    %c0_i32_1 = arith.constant 0 : i32
    return %c0_i32, %c0_i32_0 : i32, i32
  }
  func.func @transform_2(%arg0: i32) -> (i32, i32) {
    %c0_i32 = arith.constant 0 : i32
    %c0_i32_0 = arith.constant 0 : i32
    %c0_i32_1 = arith.constant 0 : i32
    return %c0_i32, %c0_i32_0 : i32, i32
  }
  func.func @transform_3(%arg0: i32) -> (i32, i32, i32) {
    %c0_i32 = arith.constant 0 : i32
    %c0_i32_0 = arith.constant 0 : i32
    %c0_i32_1 = arith.constant 0 : i32
    return %arg0, %c0_i32, %c0_i32_0 : i32, i32, i32
  }
}

</mosaic_0001>

<bundles_post_ra>
// kernel: tpu_custom_call.1
= control target key start
LH: loop header
LB: loop body
LE: loop exit
PB: predicated region body
PF: predicated region fallthrough
CT: control target
= control target key end

     0   :  { %8 = vsyncpa [#allocation3], 0  ;;  %s983_s0 = inlined_call_operand.hbm [shape: f32[2,32,256], index: 0, kind: input, shape index: {}]   ;;  %s984_s1 = inlined_call_operand.vmem [shape: f32[32,2], index: 1, kind: input, shape index: {}]   ;;  %s985_s2 = inlined_call_operand.vmem [shape: f32[2,32], index: 2, kind: input, shape index: {}]   ;;  %s986_s3 = inlined_call_operand.hbm [shape: f32[2,32,256], index: 3, kind: output, shape index: {}]  }
   0x1   :  { %10 = vsyncpa [#allocation3 + $0x1], 0 }
   0x2   :  { %11 = vsyncpa [#allocation4], 0 }
   0x3   :  { %13 = vsyncpa [#allocation4 + $0x1], 0  ;;  %s770_s12 = smov 0   ;;  %s772_s13 = smov 0  }
   0x4   :  { %s774_s14 = smov 0   ;;  %s776_s15 = smov 0  }
   0x5 LB: > { %s791_s16 = sadd.s32 4294967295, %s740_s15   ;;  %s549_s17 = sadd.s32 4294967294, %s740_s15   ;;  %s740_s15 = sphi %s776_s15, %s1001_s15   ;;  %s736_s14 = sphi %s774_s14, %s1000_s14   ;;  %s732_s13 = sphi %s772_s13, %s999_s13   ;;  %s728_s12 = sphi %s770_s12, %s998_s12  }
   0x6   : > { %s795_s18 = sadd.s32 1, %s740_s15   ;;  %s26_s19 = sadd.s32 1, %s736_s14 }
   0x7   : > { %s23_s20 = ssub.s32 %s740_s15, %s795_s18  ;;  %p33_p0 = scmp.ne.s32.totalorder %s736_s14, %s732_s13 }
   0x8   : > { %p24_p1 = scmp.eq.s32.totalorder %s23_s20, 0  ;;  %p34_p2 = scmp.eq.s32.totalorder %s740_s15, 0 }
   0x9   : > { %p39_p3 = scmp.ne.s32.totalorder %s732_s13, %s728_s12  ;;  %p40_p4 = scmp.eq.s32.totalorder %s791_s16, 0 }
   0xa   : > { %s807_s21 = scalar_select %p24_p1, %s736_s14, %s26_s19  }
   0xb   : > { %p809_p5 = por %p34_p2, %p33_p0  ;;  %p813_p6 = por %p40_p4, %p39_p3 }
   0xc   : > { %p105_p7 = scmp.eq.s32.totalorder %s791_s16, 1  ;;  %p111_p8 = scmp.eq.s32.totalorder %s549_s17, 1 }
   0xd   : > { %s990_s23 = scalar_select %p813_p6, 1, 0 }
   0xe   : > { %p604_p10 = scmp.lt.s32.totalorder %s740_s15, 2  ;;  %p820_p11 = por %p105_p7, %p33_p0 }
   0xf   : > { %p824_p12 = por %p111_p8, %p39_p3  ;;  %s137_s26 = sand.u32 1, %s736_s14  }
  0x10   : > { %s991_s24 = scalar_select %p820_p11, 1, 0 }
  0x11   : > { %s992_s25 = scalar_select %p824_p12, 1, 0 }
  0x12   : > { %s567_s27 = sshll.u32 %s740_s15, 10  ;;  %s552_s28 = sshll.u32 %s137_s26, 6 }
  0x13   : > { %s833_s4 = scalar_lea.hbm %s983_s0, %s567_s27  ;;  %s141_s5 = scalar_lea.vmem [#allocation2], %s552_s28 }
  0x14   : > { %s148_s6 = sshll.u32 %s141_s5, 4  ;;  %p837_p13 = pnand %p604_p10, %p809_p5  ;;  %s841_s6 = int_to_ptr.vmem [resolvable:$true] %s148_s6 }
  0x15   : > { %s843_s8 = scalar_lea.sflag [#allocation3], %s137_s26  ;;  %s648_s9 = scalar_lea.hbm %s833_s4, 1024 }
  0x16   : > { %p649_p0 = scmp.ne.s32.totalorder %s833_s4, %s648_s9  ;;  %p650_p1 = pneg %p837_p13 }
  0x17   : > { %s653_s17 = scalar_lea.hbm %s983_s0, 2048  ;;  %p654_p4 = scmp.lt.s32.totalorder %s833_s4, %s983_s0 }
  0x18   : > { %p651_p2 = pnand %p650_p1, %p649_p0  ;;  %p655_p5 = scmp.lt.s32.totalorder %s653_s17, %s648_s9 }
  0x1a   : > { %p652_p3 = pneg %p651_p2  ;;  %p656_p7 = por %p655_p5, %p654_p4 }
  0x1c   : > { %p657_p8 = pnand %p656_p7, %p652_p3 }
  0x1e   : > { %660 = shalt.err (!%p657_p8)
}
  0x1f   : > { %s661_s22 = scalar_lea.vmem %s841_s6, 1024  ;;  %s742_s26 = smov [#allocation2]  }
  0x20   : > { %p662_p10 = scmp.ne.s32.totalorder %s841_s6, %s661_s22  ;;  %s666_s27 = sshll.u32 %s742_s26, 4  ;;  %s667_s27 = int_to_ptr.vmem [resolvable:$false] %s666_s27 }
  0x21   : > { %s668_s28 = scalar_lea.vmem %s667_s27, 2048  ;;  %p669_p2 = scmp.lt.s32.totalorder %s841_s6, %s667_s27 }
  0x22   : > { %p664_p9 = pnand %p662_p10, %p650_p1  ;;  %p670_p12 = scmp.lt.s32.totalorder %s668_s28, %s661_s22 }
  0x24   : > { %p665_p0 = pneg %p664_p9  ;;  %p671_p11 = por %p670_p12, %p669_p2 }
  0x26   : > { %p672_p6 = pnand %p671_p11, %p665_p0 }
  0x28   : > { %675 = shalt.err (!%p672_p6)
}
  0x29   : > { %s743_s29 = smov 256   ;;  %s744_s30 = smov 16  }
  0x2a   : > { %599 = dma.hbm_to_vmem [thread:$0]  (!%p837_p13), %s833_s4, 1024, %s841_s6, %s843_s8, %s743_s29, %s743_s29, %s744_s30  }
  0x2b   : > { %p555_p9 = scmp.ge.s32.totalorder %s740_s15, 1  ;;  %p156_p1 = scmp.lt.s32.totalorder %s740_s15, 3 }
  0x2d   : > { %p157_p3 = pnand %p555_p9, %p156_p1 }
  0x2e   : > { %s867_s5 = sand.u32 (!%p157_p3), 1, %s732_s13   ;;  %p994_p6 = scmp.ne.s32.totalorder (!%p157_p3), %s990_s23, 0 }
  0x2f   : > { %160 = sbr.rel (%p157_p3) target bundleno = 776 (0x308), region = 32  ;;  %s556_s9 = sshll.u32 (!%p157_p3), %s867_s5, 6 }
  0x30   : > { %s163_s10 = scalar_lea.sflag (!%p157_p3), [#allocation3], %s867_s5  ;;  %s166_s11 = scalar_lea.vmem (!%p157_p3), [#allocation2], %s556_s9 }
  0x34   : > { %719 = dma.done.wait (%p994_p6), %s163_s10, 1024  }
  0x35   : > { %721 = vsyncadd (%p994_p6), %s163_s10, 4294966272  ;;  %v877_v0 = vld [vmem:[%s166_s11 + $0x20] sm:$0xff]  ;;  %v879_v1 = vld [vmem:[%s166_s11 + $0x28] sm:$0xff]  ;;  %v745_v16 = vmov 0.0   ;;  %vm746_vm0 = vmmov 0   ;;  %v242_v21 = vlaneseq  ;;  %vm253_vm1 = vcmask 130112  }
  0x36   : > { %v881_v2 = vld [vmem:[%s166_s11] sm:$0xff]  ;;  %v203_v3 = vadd.f32 %v879_v1, %v877_v0  ;;  %v885_v4 = vld [vmem:[%s166_s11 + $0x8] sm:$0xff]  ;;  %v887_v5 = vld [vmem:[%s166_s11 + $0x30] sm:$0xff]  ;;  %v215_v15 = vmax.f32 %v877_v0, %v879_v1  ;;  %576 = vmatprep.subr.mxu0 %v745_v16  ;;  %587 = vmatprep.subr.mxu1 %v745_v16  ;;  %vm260_vm2 = vcmask 195712   ;;  %vm267_vm3 = vcmask 261312   ;;  %s188_s27 = scalar_lea.vmem [#allocation5], %s556_s9 }
  0x37   : > { %v889_v6 = vld [vmem:[%s166_s11 + $0x38] sm:$0xff]  ;;  %v197_v7 = vadd.f32 %v885_v4, %v881_v2  ;;  %v893_v8 = vld [vmem:[%s166_s11 + $0x10] sm:$0xff]  ;;  %v209_v13 = vmax.f32 %v881_v2, %v885_v4  ;;  %v234_v19 = vld [vmem:[%s984_s1 + $0x8] sm:$0xff]  ;;  %584 = vmatprep.mubr.msk.f32.mxu0 %vm746_vm0, %v745_v16  ;;  %589 = vmatprep.mubr.msk.f32.mxu1 %vm746_vm0, %v745_v16  ;;  %v243_v24 = vand.u32 127, %v242_v21  ;;  %v245_v28 = vshrl.u32 %v242_v21, 7  ;;  %s476_s28 = sshll.u32 %s188_s27, 4  ;;  %s933_s28 = int_to_ptr.vmem [resolvable:$true] %s476_s28 }
  0x38   : > { %v895_v9 = vld [vmem:[%s166_s11 + $0x18] sm:$0xff]  ;;  %204 = vadd.xlane.f32.xlu1 %v203_v3  ;;  %v206_v10 = vadd.f32 %v889_v6, %v887_v5  ;;  %v218_v14 = vmax.f32 %v887_v5, %v889_v6  ;;  %v235_v18 = vld [vmem:[%s984_s1 + $0x10] sm:$0xff]  ;;  %v233_v20 = vld [vmem:[%s984_s1] sm:$0xff]  ;;  %vm269_vm4 = vcmask 261120   ;;  %vm347_vm5 = vcmask 1041408   ;;  %s568_s29 = sshll.u32 %s791_s16, 10 }
  0x39   : > { %198 = vadd.xlane.f32.xlu0 %v197_v7  ;;  %v200_v11 = vadd.f32 %v895_v9, %v893_v8  ;;  %v212_v12 = vmax.f32 %v893_v8, %v895_v9  ;;  %v236_v17 = vld [vmem:[%s984_s1 + $0x18] sm:$0xff]  ;;  %v248_v29 = vadd.s32 4294967288, %v243_v24  ;;  %v262_v34 = vadd.s32 4294967272, %v243_v24  ;;  %v237_v58 = vld [vmem:[%s985_s2] sm:$0x3]  ;;  %s938_s10 = scalar_lea.hbm %s986_s3, %s568_s29  ;;  %s463_s16 = scalar_lea.sflag [#allocation4], %s867_s5 }
  0x3a   : > { %577 = vmatpush3.msra.mxu0 %v236_v17  ;;  %v255_v36 = vadd.s32 4294967280, %v243_v24  ;;  %v246_v40 = vsub.s32 %v243_v24, %v245_v28  ;;  %588 = vmatpush3.msk.msra.mxu1 %vm347_vm5, %v237_v58  ;;  %vm343_vm6 = vcmask 15360   ;;  %s676_s11 = scalar_lea.vmem %s933_s28, 1024  ;;  %p995_p12 = scmp.ne.s32.totalorder %s991_s24, 0 }
  0x3b   : > { %578 = vmatprep.subr.mxu0 %v745_v16  ;;  %v251_v38 = vsub.s32 %v248_v29, %v245_v28  ;;  %v265_v44 = vsub.s32 %v262_v34, %v245_v28  ;;  %p677_p11 = scmp.ne.s32.totalorder %s933_s28, %s676_s11  ;;  %s747_s23 = smov [#allocation5]  }
  0x3c   : > { %207 = vadd.xlane.f32.xlu1 %v206_v10  ;;  %579 = vmatpush3.msra.mxu0 %v235_v18  ;;  %v258_v47 = vsub.s32 %v255_v36, %v245_v28  ;;  %s680_s4 = sshll.u32 %s747_s23, 4  ;;  %s681_s4 = int_to_ptr.vmem [resolvable:$false] %s680_s4 }
  0x3d   : > { %201 = vadd.xlane.f32.xlu0 %v200_v11  ;;  %580 = vmatprep.subr.mxu0 %v745_v16  ;;  %v429_v11 = vsub.s32 0, %v245_v28  ;;  %p678_p13 = pnand %p677_p11, %p995_p12  ;;  %s682_s6 = scalar_lea.vmem %s681_s4, 2048 }
  0x3e   : > { %581 = vmatpush3.msra.mxu0 %v234_v19  ;;  %p683_p5 = scmp.lt.s32.totalorder %s933_s28, %s681_s4  ;;  %p684_p7 = scmp.lt.s32.totalorder %s682_s6, %s676_s11 }
  0x3f   : > { %582 = vmatprep.subr.mxu0 %v745_v16  ;;  %p679_p4 = pneg %p678_p13 }
  0x40   : > { %213 = vmax.xlane.f32.xlu1 %v212_v12  ;;  %583 = vmatpush3.msra.mxu0 %v233_v20  ;;  %p685_p8 = por %p684_p7, %p683_p5 }
  0x41   : > { %210 = vmax.xlane.f32.xlu0 %v209_v13 }
  0x42   : > { %p686_p10 = pnand %p685_p8, %p679_p4 }
  0x44   : > { %219 = vmax.xlane.f32.xlu1 %v218_v14 }
  0x45   : > { %216 = vmax.xlane.f32.xlu0 %v215_v15 }
  0xc1   : > { %v205_v22 = vpop.xlane.xlu1 %204 }
  0xc2   : > { %v199_v23 = vpop.xlane.xlu0 %198  ;;  %v223_v41 = vmul.f32 0.00390625, %v205_v22 }
  0xc3   : > { %v221_v30 = vmul.f32 0.00390625, %v199_v23 }
  0xc5   : > { %v208_v25 = vpop.xlane.xlu1 %207 }
  0xc6   : > { %v202_v26 = vpop.xlane.xlu0 %201  ;;  %v224_v37 = vmul.f32 0.00390625, %v208_v25 }
  0xc7   : > { %v222_v27 = vmul.f32 0.00390625, %v202_v26 }
  0xc9   : > { %v214_v31 = vpop.xlane.xlu1 %213 }
  0xca   : > { %v226_v32 = vadd.f32 %v222_v27, %v214_v31  ;;  %v211_v33 = vpop.xlane.xlu0 %210 }
  0xcb   : > { %v225_v35 = vadd.f32 %v221_v30, %v211_v33 }
  0xcc   : > { %v230_v39 = vmul.f32 0.5, %v226_v32 }
  0xcd   : > { %v229_v42 = vmul.f32 0.5, %v225_v35  ;;  %v220_v43 = vpop.xlane.xlu1 %219 }
  0xce   : > { %v228_v45 = vadd.f32 %v224_v37, %v220_v43  ;;  %v217_v46 = vpop.xlane.xlu0 %216  ;;  %v252_v49 = vrot.slane %v230_v39, %v251_v38 }
  0xcf   : > { %v227_v48 = vadd.f32 %v223_v41, %v217_v46  ;;  %v247_v50 = vrot.slane %v229_v42, %v246_v40 }
  0xd0   : > { %v232_v51 = vmul.f32 0.5, %v228_v45 }
  0xd1   : > { %v231_v52 = vmul.f32 0.5, %v227_v48  ;;  %v254_v55 = vsel %vm253_vm1, %v252_v49, %v247_v50 }
  0xd2   : > { %v266_v53 = vrot.slane %v232_v51, %v265_v44 }
  0xd3   : > { %v259_v54 = vrot.slane %v231_v52, %v258_v47 }
  0xd5   : > { %v261_v56 = vsel %vm260_vm2, %v259_v54, %v254_v55 }
  0xd6   : > { %v268_v57 = vsel %vm267_vm3, %v266_v53, %v261_v56 }
  0xd7   : > { %585 = vmatmul.mubr.msk.f32.vlgmr.msra.gmra.mxu0 %vm269_vm4, %v268_v57 }
 0x197   : > { %v338_v59 = vpop.f32.mrf.mxu0 }
 0x198   : > { %v342_v60 = vmax.f32 %v338_v59, 0.0 }
 0x199   : > { %v586_v61 = vpop.f32.mrf.mxu0 }
 0x19a   : > { %590 = vmatmul.mubr.msk.f32.vlgmr.msra.gmra.mxu1 %vm343_vm6, %v342_v60 }
 0x25a   : > { %v417_v62 = vpop.f32.mrf.mxu1 }
 0x25b   : > { %v561_v63 = vmul.f32 -1.442695, %v417_v62 }
 0x25c   : > { %v591_v3 = vpop.f32.mrf.mxu1 }
 0x25d   : > { %644 = vpow2.f32 %v561_v63 }
 0x26a   : > { %v645_v7 = vpop.eup %644 }
 0x26b   : > { %v424_v10 = vadd.f32 1.0, %v645_v7 }
 0x26d   : > { %646 = vrcp.f32 %v424_v10 }
 0x27a   : > { %v647_v12 = vpop.eup %646 }
 0x27b   : > { %v430_v13 = vrot.slane %v647_v12, %v429_v11 }
 0x27d   : > { %436 = vbcast.lane.b32.xlu1 %v430_v13, 264  ;;  %432 = vbcast.lane.b32.xlu0 %v430_v13, 256 }
 0x281   : > { %440 = vbcast.lane.b32.xlu1 %v430_v13, 272 }
 0x285   : > { %444 = vbcast.lane.b32.xlu1 %v430_v13, 280 }
 0x2ef   : > { %v437_v14 = vpop.permute.xlu1 %436  ;;  %v433_v15 = vpop.permute.xlu0 %432 }
 0x2f0   : > { %v448_v16 = vmul.f32 %v437_v14, %v893_v8  ;;  %v449_v17 = vmul.f32 %v437_v14, %v895_v9  ;;  %v446_v18 = vmul.f32 %v433_v15, %v881_v2  ;;  %v447_v19 = vmul.f32 %v433_v15, %v885_v4 }
 0x2f2   : > { %456 = vst [vmem:[%s188_s27 + $0x10] sm:$0xff] %v448_v16  ;;  %457 = vst [vmem:[%s188_s27 + $0x18] sm:$0xff] %v449_v17 }
 0x2f3   : > { %454 = vst [vmem:[%s188_s27] sm:$0xff] %v446_v18  ;;  %455 = vst [vmem:[%s188_s27 + $0x8] sm:$0xff] %v447_v19  ;;  %v441_v20 = vpop.permute.xlu1 %440 }
 0x2f4   : > { %v450_v21 = vmul.f32 %v441_v20, %v877_v0  ;;  %v451_v8 = vmul.f32 %v441_v20, %v879_v1 }
 0x2f6   : > { %458 = vst [vmem:[%s188_s27 + $0x20] sm:$0xff] %v450_v21  ;;  %459 = vst [vmem:[%s188_s27 + $0x28] sm:$0xff] %v451_v8 }
 0x2f7   : > { %v445_v2 = vpop.permute.xlu1 %444 }
 0x2f8   : > { %v452_v4 = vmul.f32 %v445_v2, %v887_v5  ;;  %v453_v0 = vmul.f32 %v445_v2, %v889_v6 }
 0x2fa   : > { %460 = vst [vmem:[%s188_s27 + $0x30] sm:$0xff] %v452_v4  ;;  %461 = vst [vmem:[%s188_s27 + $0x38] sm:$0xff] %v453_v0 }
 0x2fb   : > { %689 = shalt.err (!%p686_p10)
}
 0x2fc   : > { %s690_s7 = scalar_lea.hbm %s938_s10, 1024  ;;  %s694_s19 = scalar_lea.hbm %s986_s3, 2048 }
 0x2fd   : > { %p691_p0 = scmp.ne.s32.totalorder %s938_s10, %s690_s7  ;;  %p695_p1 = scmp.lt.s32.totalorder %s938_s10, %s986_s3 }
 0x2fe   : > { %p696_p3 = scmp.lt.s32.totalorder %s694_s19, %s690_s7 }
 0x2ff   : > { %p692_p2 = pnand %p691_p0, %p995_p12 }
 0x300   : > { %p697_p6 = por %p696_p3, %p695_p1 }
 0x301   : > { %p693_p9 = pneg %p692_p2 }
 0x303   : > { %p698_p11 = pnand %p697_p6, %p693_p9 }
 0x305   : > { %701 = shalt.err (!%p698_p11)
}
 0x306   : > { %s748_s26 = smov 256   ;;  %s749_s27 = smov 16  }
 0x307   : > { %594 = dma.vmem_to_hbm [thread:$0]  (%p995_p12), %s933_s28, 1024, %s938_s10, %s463_s16, %s748_s26, %s748_s26, %s749_s27  }
 0x308 PF: > { %s491_s29 = sand.u32 1, %s728_s12   ;;  %p996_p13 = scmp.ne.s32.totalorder %s992_s25, 0 }
 0x309   : > { %p997_p4 = scmp.ge.s32.totalorder %s740_s15, 2  ;;  %s492_s30 = scalar_lea.sflag [#allocation4], %s491_s29 }
 0x30b   : > { %p601_p5 = pnand %p997_p4, %p996_p13 }
 0x30d   : > { %p602_p7 = pneg %p601_p5 }
 0x30f   : > { %723 = dma.done.wait (%p602_p7), %s492_s30, 1024  }
 0x310   : > { %725 = vsyncadd (%p602_p7), %s492_s30, 4294966272  ;;  %p16_p8 = scmp.ge.s32.totalorder %s795_s18, 4   ;;  %s998_s12 = smov %s732_s13 }
 0x311   : > { %s999_s13 = smov %s736_s14  ;;  %s1000_s14 = smov %s807_s21 }
 0x312   : > { %s1001_s15 = smov %s795_s18  ;;  %18 = sbr.rel (!%p16_p8) target bundleno = 5 (0x5), region = 77 }
 0x317   :  { %497 = vsyncpa [#allocation3], 1 }
 0x318   :  { %499 = vsyncpa [#allocation3 + $0x1], 1 }
 0x319   :  { %500 = vsyncpa [#allocation4], 1 }
 0x31a   :  { %502 = vsyncpa [#allocation4 + $0x1], 1 }

</bundles_post_ra>
